<compile_context>
chip_gen: v7x
topology: tpu7x:2x2x1
jax: 0.10.0
libtpu: 0.0.40
codegen_flags: <defaults>
</compile_context>

<pallas_src>
import jax
import jax.numpy as jnp
from jax.experimental import pallas as pl
from jax.experimental.pallas import tpu as pltpu

EMBED_DIM = 32


def _net_kernel(idx_ref, ut_ref, mt_ref, w_ref, b_ref, o_ref):
    # idx_ref : (2, TB) int32 VMEM  -- row 0 = user ids, row 1 = movie ids for this tile
    # ut_ref  : (U, 32) f32 VMEM    -- full user embedding table (resident)
    # mt_ref  : (M, 32) f32 VMEM    -- full movie embedding table (resident)
    # w_ref   : (2, 32) f32 VMEM    -- row 0 = W[:, :32], row 1 = W[:, 32:]
    # b_ref   : (1, 1)  f32 SMEM    -- Linear bias
    # o_ref   : (1, 1, TB) f32 VMEM -- lane-dense output block for this batch tile
    U = ut_ref.shape[0]
    M = mt_ref.shape[0]
    TB = o_ref.shape[-1]

    u_idx = idx_ref[0:1, :]                      # (1, TB) int32
    m_idx = idx_ref[1:2, :]                      # (1, TB) int32

    # Per-table-row dot with the matching half of the Linear weight (VPU mul + XLU lane reduce).
    tu = jnp.sum(ut_ref[...] * w_ref[0:1, :], axis=1, keepdims=True)   # (U, 1)
    tm = jnp.sum(mt_ref[...] * w_ref[1:2, :], axis=1, keepdims=True)   # (M, 1)

    # Transposed one-hot gather: mask (rows, TB), select tu/tm rows, sublane-reduce -> (1, TB).
    u_oh = jax.lax.broadcasted_iota(jnp.int32, (U, TB), 0) == u_idx    # (U, TB) bool
    m_oh = jax.lax.broadcasted_iota(jnp.int32, (M, TB), 0) == m_idx    # (M, TB) bool
    y = jnp.sum(jnp.where(u_oh, tu, 0.0), axis=0, keepdims=True)       # (1, TB)
    y = y + jnp.sum(jnp.where(m_oh, tm, 0.0), axis=0, keepdims=True)   # (1, TB)

    o_ref[...] = (y + b_ref[0, 0]).reshape(1, 1, TB)


def net_forward(x_idx, user_table, movie_table, w, b, *, tb=256):
    """x_idx: (B, 2) int; user_table: (U, 32); movie_table: (M, 32);
    w: (1, 64) Linear weight (PyTorch layout); b: (1,) bias.  Returns (B, 1) float32."""
    B = x_idx.shape[0]
    U, D = user_table.shape
    M = movie_table.shape[0]
    assert D == EMBED_DIM and w.shape == (1, 2 * EMBED_DIM)

    grid = pl.cdiv(B, tb)
    b_pad = grid * tb

    # Indices: pad batch to a multiple of TB (pad ids = 0; padded results are sliced off),
    # stored with the long (batch) axis last for a clean lane layout.
    idx = jnp.zeros((2, b_pad), jnp.int32)
    idx = idx.at[:, :B].set(x_idx.astype(jnp.int32).T)

    w2 = w.reshape(2, EMBED_DIM).astype(jnp.float32)       # row 0 = user half, row 1 = movie half
    bias = b.reshape(1, 1).astype(jnp.float32)

    out = pl.pallas_call(
        _net_kernel,
        out_shape=jax.ShapeDtypeStruct((grid, 1, tb), jnp.float32),
        grid=(grid,),
        in_specs=[
            pl.BlockSpec((2, tb), lambda i: (0, i)),              # (2, TB) index tile
            pl.BlockSpec((U, D), lambda i: (0, 0)),               # resident user table
            pl.BlockSpec((M, D), lambda i: (0, 0)),               # resident movie table
            pl.BlockSpec((2, D), lambda i: (0, 0)),               # resident split weight
            pl.BlockSpec(memory_space=pltpu.MemorySpace.SMEM),    # bias scalar
        ],
        out_specs=pl.BlockSpec((1, 1, tb), lambda i: (i, 0, 0)),
        compiler_params=pltpu.CompilerParams(
            dimension_semantics=("parallel",)),
    )(idx, user_table.astype(jnp.float32), movie_table.astype(jnp.float32), w2, bias)

    return out.reshape(b_pad, 1)[:B]


if __name__ == "__main__":
    key = jax.random.PRNGKey(0)
    k_u, k_m, k_w, k_b, k_i, k_j = jax.random.split(key, 6)

    num_users, num_movies, batch = 16, 24, 8

    # Deterministic parameter init (shapes from Net.__init__):
    #   nn.Embedding(num_users, 32), nn.Embedding(num_movies, 32)  -> N(0,1)
    #   nn.Linear(64, 1) -> uniform(-1/sqrt(64), 1/sqrt(64))
    user_table = jax.random.normal(k_u, (num_users, EMBED_DIM), jnp.float32)
    movie_table = jax.random.normal(k_m, (num_movies, EMBED_DIM), jnp.float32)
    bound = 1.0 / jnp.sqrt(64.0)
    w = jax.random.uniform(k_w, (1, 2 * EMBED_DIM), jnp.float32, -bound, bound)
    b = jax.random.uniform(k_b, (1,), jnp.float32, -bound, bound)

    user_ids = jax.random.randint(k_i, (batch,), 0, num_users, jnp.int32)
    movie_ids = jax.random.randint(k_j, (batch,), 0, num_movies, jnp.int32)
    x = jnp.stack([user_ids, movie_ids], axis=1)   # (B, 2) int32

    out = jax.block_until_ready(net_forward(x, user_table, movie_table, w, b))

    # Pure-JAX reference of the PyTorch forward pass.
    ref = jnp.concatenate(
        [user_table[x[:, 0]], movie_table[x[:, 1]]], axis=1) @ w.T + b
    assert out.shape == (batch, 1)
    assert jnp.allclose(out, ref, atol=1e-5, rtol=1e-5)

    print("KERNEL_OK")
</pallas_src>

<mosaic_0001>
module attributes {stable_mosaic.version = 11 : i64} {
  func.func @_net_kernel(%arg0: i32, %arg1: memref<2x256xi32, #tpu.memory_space<vmem>>, %arg2: memref<16x32xf32, #tpu.memory_space<vmem>>, %arg3: memref<24x32xf32, #tpu.memory_space<vmem>>, %arg4: memref<2x32xf32, #tpu.memory_space<vmem>>, %arg5: memref<1x1xf32, #tpu.memory_space<smem>>, %arg6: memref<1x1x256xf32, #tpu.memory_space<vmem>>) attributes {dimension_semantics = [#tpu.dimension_semantics<parallel>], iteration_bounds = array<i64: 1>, scalar_prefetch = 0 : i64, scratch_operands = 0 : i64, tpu.core_type = #tpu.core_type<tc>, window_params = [{transform_indices = @transform_0, window_bounds = array<i64: 2, 256>}, {pipeline_mode = #tpu.pipeline_mode<synchronous>, transform_indices = @transform_1, window_bounds = array<i64: 16, 32>}, {pipeline_mode = #tpu.pipeline_mode<synchronous>, transform_indices = @transform_2, window_bounds = array<i64: 24, 32>}, {pipeline_mode = #tpu.pipeline_mode<synchronous>, transform_indices = @transform_3, window_bounds = array<i64: 2, 32>}, {transform_indices = @transform_4, window_bounds = array<i64: 1, 1>}, {transform_indices = @transform_5, window_bounds = array<i64: 1, 1, 256>}]} {
    %c0 = arith.constant 0 : index
    %c0_0 = arith.constant 0 : index
    %0 = vector.load %arg1[%c0, %c0_0] : memref<2x256xi32, #tpu.memory_space<vmem>>, vector<1x256xi32>
    %c1 = arith.constant 1 : index
    %c0_1 = arith.constant 0 : index
    %1 = vector.load %arg1[%c1, %c0_1] : memref<2x256xi32, #tpu.memory_space<vmem>>, vector<1x256xi32>
    %c0_2 = arith.constant 0 : index
    %c0_3 = arith.constant 0 : index
    %2 = vector.load %arg2[%c0_2, %c0_3] : memref<16x32xf32, #tpu.memory_space<vmem>>, vector<16x32xf32>
    %c0_4 = arith.constant 0 : index
    %c0_5 = arith.constant 0 : index
    %3 = vector.load %arg4[%c0_4, %c0_5] : memref<2x32xf32, #tpu.memory_space<vmem>>, vector<1x32xf32>
    %4 = vector.broadcast %3 : vector<1x32xf32> to vector<16x32xf32>
    %5 = arith.mulf %2, %4 : vector<16x32xf32>
    %cst = arith.constant dense<0.000000e+00> : vector<16xf32>
    %6 = vector.multi_reduction <add>, %5, %cst [1] : vector<16x32xf32> to vector<16xf32>
    %7 = vector.shape_cast %6 : vector<16xf32> to vector<16x1xf32>
    %c0_6 = arith.constant 0 : index
    %c0_7 = arith.constant 0 : index
    %8 = vector.load %arg3[%c0_6, %c0_7] : memref<24x32xf32, #tpu.memory_space<vmem>>, vector<24x32xf32>
    %c1_8 = arith.constant 1 : index
    %c0_9 = arith.constant 0 : index
    %9 = vector.load %arg4[%c1_8, %c0_9] : memref<2x32xf32, #tpu.memory_space<vmem>>, vector<1x32xf32>
    %10 = vector.broadcast %9 : vector<1x32xf32> to vector<24x32xf32>
    %11 = arith.mulf %8, %10 : vector<24x32xf32>
    %cst_10 = arith.constant dense<0.000000e+00> : vector<24xf32>
    %12 = vector.multi_reduction <add>, %11, %cst_10 [1] : vector<24x32xf32> to vector<24xf32>
    %13 = vector.shape_cast %12 : vector<24xf32> to vector<24x1xf32>
    %14 = tpu.iota {dimensions = array<i32: 0>} : vector<16x256xi32>
    %15 = vector.broadcast %0 : vector<1x256xi32> to vector<16x256xi32>
    %16 = arith.cmpi eq, %14, %15 : vector<16x256xi32>
    %17 = tpu.iota {dimensions = array<i32: 0>} : vector<24x256xi32>
    %18 = vector.broadcast %1 : vector<1x256xi32> to vector<24x256xi32>
    %19 = arith.cmpi eq, %17, %18 : vector<24x256xi32>
    %cst_11 = arith.constant 0.000000e+00 : f32
    %20 = vector.shape_cast %7 : vector<16x1xf32> to vector<16x1xf32>
    %21 = vector.broadcast %20 : vector<16x1xf32> to vector<16x256xf32>
    %22 = vector.broadcast %cst_11 : f32 to vector<16x256xf32>
    %23 = arith.select %16, %21, %22 : vector<16x256xi1>, vector<16x256xf32>
    %cst_12 = arith.constant dense<0.000000e+00> : vector<256xf32>
    %24 = vector.multi_reduction <add>, %23, %cst_12 [0] : vector<16x256xf32> to vector<256xf32>
    %25 = vector.shape_cast %24 : vector<256xf32> to vector<1x256xf32>
    %cst_13 = arith.constant 0.000000e+00 : f32
    %26 = vector.shape_cast %13 : vector<24x1xf32> to vector<24x1xf32>
    %27 = vector.broadcast %26 : vector<24x1xf32> to vector<24x256xf32>
    %28 = vector.broadcast %cst_13 : f32 to vector<24x256xf32>
    %29 = arith.select %19, %27, %28 : vector<24x256xi1>, vector<24x256xf32>
    %cst_14 = arith.constant dense<0.000000e+00> : vector<256xf32>
    %30 = vector.multi_reduction <add>, %29, %cst_14 [0] : vector<24x256xf32> to vector<256xf32>
    %31 = vector.shape_cast %30 : vector<256xf32> to vector<1x256xf32>
    %32 = arith.addf %25, %31 : vector<1x256xf32>
    %c0_15 = arith.constant 0 : index
    %c0_16 = arith.constant 0 : index
    %33 = memref.load %arg5[%c0_15, %c0_16] : memref<1x1xf32, #tpu.memory_space<smem>>
    %34 = vector.broadcast %33 : f32 to vector<1x256xf32>
    %35 = arith.addf %32, %34 : vector<1x256xf32>
    %36 = vector.shape_cast %35 : vector<1x256xf32> to vector<1x1x256xf32>
    %c0_17 = arith.constant 0 : index
    %c0_18 = arith.constant 0 : index
    %c0_19 = arith.constant 0 : index
    %37 = vector.load %arg6[%c0_17, %c0_18, %c0_19] : memref<1x1x256xf32, #tpu.memory_space<vmem>>, vector<1x1x256xf32>
    tpu.vector_store %arg6[%c0_17, %c0_18, %c0_19], %36 {strides = array<i32>} : memref<1x1x256xf32, #tpu.memory_space<vmem>>, vector<1x1x256xf32>,
    return
  }
  func.func @transform_0(%arg0: i32) -> (i32, i32) {
    %c0_i32 = arith.constant 0 : i32
    %c0_i32_0 = arith.constant 0 : i32
    return %c0_i32, %arg0 : i32, i32
  }
  func.func @transform_1(%arg0: i32) -> (i32, i32) {
    %c0_i32 = arith.constant 0 : i32
    %c0_i32_0 = arith.constant 0 : i32
    %c0_i32_1 = arith.constant 0 : i32
    return %c0_i32, %c0_i32_0 : i32, i32
  }
  func.func @transform_2(%arg0: i32) -> (i32, i32) {
    %c0_i32 = arith.constant 0 : i32
    %c0_i32_0 = arith.constant 0 : i32
    %c0_i32_1 = arith.constant 0 : i32
    return %c0_i32, %c0_i32_0 : i32, i32
  }
  func.func @transform_3(%arg0: i32) -> (i32, i32) {
    %c0_i32 = arith.constant 0 : i32
    %c0_i32_0 = arith.constant 0 : i32
    %c0_i32_1 = arith.constant 0 : i32
    return %c0_i32, %c0_i32_0 : i32, i32
  }
  func.func @transform_4(%arg0: i32) -> (i32, i32) {
    %c0_i32 = arith.constant 0 : i32
    %c0_i32_0 = arith.constant 0 : i32
    %c0_i32_1 = arith.constant 0 : i32
    return %c0_i32, %c0_i32_0 : i32, i32
  }
  func.func @transform_5(%arg0: i32) -> (i32, i32, i32) {
    %c0_i32 = arith.constant 0 : i32
    %c0_i32_0 = arith.constant 0 : i32
    %c0_i32_1 = arith.constant 0 : i32
    return %arg0, %c0_i32, %c0_i32_0 : i32, i32, i32
  }
}

</mosaic_0001>

<bundles_post_ra>
// kernel: tpu_custom_call.1
= control target key start
LH: loop header
LB: loop body
LE: loop exit
PB: predicated region body
PF: predicated region fallthrough
CT: control target
= control target key end

     0   :  { %11 = vsyncpa [#allocation4], 0  ;;  %s436_s0 = inlined_call_operand.hbm [shape: s32[2,256], index: 0, kind: input, shape index: {}]   ;;  %s437_s1 = inlined_call_operand.hbm [shape: f32[16,32], index: 1, kind: input, shape index: {}]   ;;  %s438_s2 = inlined_call_operand.hbm [shape: f32[24,32], index: 2, kind: input, shape index: {}]   ;;  %s439_s3 = inlined_call_operand.vmem [shape: f32[2,32], index: 3, kind: input, shape index: {}]   ;;  %s440_s4 = inlined_call_operand.<no memory space> [shape: f32[1,1], index: 4, kind: input, shape index: {}]   ;;  %s441_s5 = inlined_call_operand.hbm [shape: f32[1,1,256], index: 5, kind: output, shape index: {}]  }
   0x1   :  { %12 = vsyncpa [#allocation7], 0 }
   0x2   :  { %13 = vsyncpa [#allocation5], 0  ;;  %s318_s18 = smov [#allocation6]   ;;  %s224_s22 = scalar_lea.hbm %s437_s1, 256 }
   0x3   :  { %s29_s19 = sshll.u32 %s318_s18, 4  ;;  %p225_p0 = scmp.ne.s32.totalorder %s437_s1, %s224_s22  ;;  %s30_s19 = int_to_ptr.vmem [resolvable:$true] %s29_s19 }
   0x4   :  { %p228_p1 = scmp.lt.u32.totalorder %s224_s22, %s437_s1 }
   0x6   :  { %p230_p2 = pnand %p228_p1, %p225_p0 }
   0x8   :  { %233 = shalt.err (!%p230_p2)
}
   0x9   :  { %s234_s27 = scalar_lea.vmem %s30_s19, 256  ;;  %p239_p4 = scmp.lt.s32.totalorder %s30_s19, %s30_s19 }
   0xa   :  { %p235_p3 = scmp.ne.s32.totalorder %s30_s19, %s234_s27  ;;  %p240_p5 = scmp.lt.s32.totalorder %s234_s27, %s234_s27 }
   0xc   :  { %p241_p6 = por %p240_p5, %p239_p4 }
   0xe   :  { %p242_p7 = pnand %p241_p6, %p235_p3 }
  0x10   :  { %245 = shalt.err (!%p242_p7)
}
  0x11   :  { %s319_s28 = smov 128   ;;  %s320_s29 = smov 8  }
  0x12   :  { %35 = dma.hbm_to_vmem [thread:$0]  %s437_s1, 256, %s30_s19, [#allocation7], %s319_s28, %s319_s28, %s320_s29  }
  0x13   :  { %s321_s7 = smov [#allocation3]   ;;  %s322_s9 = smov [#allocation8]  }
  0x14   :  { %s20_s8 = sshll.u32 %s321_s7, 4  ;;  %s41_s10 = sshll.u32 %s322_s9, 4  ;;  %s21_s8 = int_to_ptr.vmem [resolvable:$true] %s20_s8  ;;  %s42_s10 = int_to_ptr.vmem [resolvable:$true] %s41_s10 }
  0x15   :  { %s246_s13 = scalar_lea.hbm %s436_s0, 64 }
  0x16   :  { %p247_p8 = scmp.ne.s32.totalorder %s436_s0, %s246_s13  ;;  %p250_p9 = scmp.lt.u32.totalorder %s246_s13, %s436_s0 }
  0x18   :  { %p252_p10 = pnand %p250_p9, %p247_p8 }
  0x1a   :  { %255 = shalt.err (!%p252_p10)
}
  0x1b   :  { %s256_s1 = scalar_lea.vmem %s21_s8, 64  ;;  %p261_p12 = scmp.lt.s32.totalorder %s21_s8, %s21_s8 }
  0x1c   :  { %p257_p11 = scmp.ne.s32.totalorder %s21_s8, %s256_s1  ;;  %p262_p13 = scmp.lt.s32.totalorder %s256_s1, %s256_s1 }
  0x1e   :  { %p263_p0 = por %p262_p13, %p261_p12 }
  0x20   :  { %p264_p1 = pnand %p263_p0, %p257_p11 }
  0x22   :  { %267 = shalt.err (!%p264_p1)
}
  0x23   :  { %23 = dma.hbm_to_vmem [thread:$0]  %s436_s0, 64, %s21_s8, [#allocation4]  }
  0x24   :  { %s268_s22 = scalar_lea.hbm %s438_s2, 384 }
  0x25   :  { %p269_p2 = scmp.ne.s32.totalorder %s438_s2, %s268_s22  ;;  %p272_p3 = scmp.lt.u32.totalorder %s268_s22, %s438_s2 }
  0x27   :  { %p274_p4 = pnand %p272_p3, %p269_p2 }
  0x29   :  { %277 = shalt.err (!%p274_p4)
}
  0x2a   :  { %s278_s27 = scalar_lea.vmem %s42_s10, 384  ;;  %p283_p6 = scmp.lt.s32.totalorder %s42_s10, %s42_s10 }
  0x2b   :  { %p279_p5 = scmp.ne.s32.totalorder %s42_s10, %s278_s27  ;;  %p284_p7 = scmp.lt.s32.totalorder %s278_s27, %s278_s27 }
  0x2d   :  { %p285_p8 = por %p284_p7, %p283_p6 }
  0x2f   :  { %p286_p9 = pnand %p285_p8, %p279_p5 }
  0x31   :  { %289 = shalt.err (!%p286_p9)
}
  0x32   :  { %47 = dma.hbm_to_vmem [thread:$0]  %s438_s2, 384, %s42_s10, [#allocation7], %s319_s28, %s319_s28, %s320_s29  }
  0x33   :  { %312 = dma.done.wait [#allocation4], 64  }
  0x34   :  { %313 = vsyncadd [#allocation4], 4294967232 }
  0x35   :  { %314 = dma.done.wait [#allocation7], 640  }
  0x36   :  { %315 = vsyncadd [#allocation7], 4294966656  ;;  %vm73_vm0 = vcmask 261120   ;;  %v80_v0 = vld [vmem:[#allocation8] sm:$0xff]  ;;  %v216_v1 = vld [vmem:[%s439_s3 + $0x1] ss:$0 sm:$0xff]  ;;  %v100_v17 = vlaneseq }
  0x37   :  { %v64_v2 = vld [vmem:[#allocation6] sm:$0xff]  ;;  %v88_v3 = vmul.f32 %v216_v1, %v80_v0  ;;  %v215_v4 = vld [vmem:[%s439_s3] ss:$0 sm:$0xff]  ;;  %v65_v6 = vld [vmem:[#allocation6 + $0x8] sm:$0xff]  ;;  %v323_v0 = vmov 1966171168  }
  0x38   :  { %v81_v5 = vld [vmem:[#allocation8 + $0x8] sm:$0xff]  ;;  %v71_v7 = vmul.f32 %v215_v4, %v64_v2  ;;  %v72_v9 = vmul.f32 %v215_v4, %v65_v6  ;;  %v82_v10 = vld [vmem:[#allocation8 + $0x10] sm:$0xff]  ;;  %v409_v18 = vshrl.u32 %v100_v17, 7  ;;  %s324_s28 = smov [#allocation9]   ;;  %vm196_vm11 = vcmp.lt.s32.totalorder %v100_v17, 256 }
  0x39   :  { %v89_v8 = vmul.f32 %v216_v1, %v81_v5  ;;  %v91_v11 = vsel %vm73_vm0, %v88_v3, 0.0  ;;  %v90_v14 = vmul.f32 %v216_v1, %v82_v10  ;;  %v61_v19 = vld [vmem:[#allocation3] ss:$2 sm:$0x3]  ;;  %v180_v1 = vunpack.c.l.s4 %v323_v0  ;;  %s205_s29 = sshll.u32 %s324_s28, 4  ;;  %s206_s29 = int_to_ptr.vmem [resolvable:$true] %s205_s29 }
  0x3a   :  { %92 = vadd.xlane.f32.xlu0 %v91_v11  ;;  %v74_v12 = vsel %vm73_vm0, %v71_v7, 0.0  ;;  %v77_v15 = vsel %vm73_vm0, %v72_v9, 0.0  ;;  %v105_v20 = vsub.s32 0, %v409_v18  ;;  %v109_v21 = vsub.s32 1, %v409_v18  ;;  %s290_s10 = scalar_lea.vmem %s206_s29, 32  ;;  %p295_p11 = scmp.lt.s32.totalorder %s206_s29, %s206_s29 }
  0x3b   :  { %75 = vadd.xlane.f32.xlu1 %v74_v12  ;;  %v94_v13 = vsel %vm73_vm0, %v89_v8, 0.0  ;;  %v97_v16 = vsel %vm73_vm0, %v90_v14, 0.0  ;;  %v63_v22 = vld [vmem:[#allocation3 + $0x1] ss:$2 sm:$0x3]  ;;  %v102_v25 = vadd.s32 8, %v409_v18  ;;  %v181_v8 = vunpack.c.0.s8 %v180_v1  ;;  %p291_p10 = scmp.ne.s32.totalorder %s206_s29, %s290_s10  ;;  %p296_p12 = scmp.lt.s32.totalorder %s290_s10, %s290_s10 }
  0x3c   :  { %v106_v23 = vrot.slane %v61_v19, %v105_v20  ;;  %v110_v24 = vrot.slane %v61_v19, %v109_v21  ;;  %v119_v27 = vrot.slane %v63_v22, %v105_v20  ;;  %v123_v28 = vrot.slane %v63_v22, %v109_v21 }
  0x3d   :  { %v115_v30 = vadd.s32 16, %v409_v18  ;;  %v184_v20 = vsub.s32 %v181_v8, %v409_v18  ;;  %p297_p13 = por %p296_p12, %p295_p11 }
  0x3e   :  { %95 = vadd.xlane.f32.xlu0 %v94_v13  ;;  %vm111_vm1 = vcmp.eq.s32.totalorder %v409_v18, %v106_v23  ;;  %vm112_vm2 = vcmp.eq.s32.totalorder %v409_v18, %v110_v24  ;;  %vm126_vm3 = vcmp.eq.s32.totalorder %v102_v25, %v119_v27  ;;  %vm127_vm4 = vcmp.eq.s32.totalorder %v102_v25, %v123_v28 }
  0x3f   :  { %78 = vadd.xlane.f32.xlu1 %v77_v15  ;;  %vm113_vm5 = vcmp.eq.s32.totalorder %v102_v25, %v106_v23  ;;  %vm114_vm6 = vcmp.eq.s32.totalorder %v102_v25, %v110_v24  ;;  %vm124_vm7 = vcmp.eq.s32.totalorder %v409_v18, %v119_v27  ;;  %vm125_vm8 = vcmp.eq.s32.totalorder %v409_v18, %v123_v28  ;;  %p298_p0 = pnand %p297_p13, %p291_p10 }
  0x40   :  { %vm128_vm9 = vcmp.eq.s32.totalorder %v115_v30, %v119_v27  ;;  %vm129_vm10 = vcmp.eq.s32.totalorder %v115_v30, %v123_v28  ;;  %v173_v13 = vstv %s440_s4 }
  0x42   :  { %98 = vadd.xlane.f32.xlu0 %v97_v16 }
  0xc7   :  { %v93_v26 = vpop.xlane.xlu0 %92 }
  0xc8   :  { %v76_v29 = vpop.xlane.xlu1 %75  ;;  %v148_v39 = vsel %vm124_vm7, %v93_v26, 0.0  ;;  %v149_v40 = vsel %vm125_vm8, %v93_v26, 0.0 }
  0xc9   :  { %v130_v31 = vsel %vm111_vm1, %v76_v29, 0.0  ;;  %v131_v32 = vsel %vm112_vm2, %v76_v29, 0.0 }
  0xcb   :  { %v96_v33 = vpop.xlane.xlu0 %95 }
  0xcc   :  { %v150_v34 = vsel %vm126_vm3, %v96_v33, 0.0  ;;  %v151_v35 = vsel %vm127_vm4, %v96_v33, 0.0  ;;  %v79_v36 = vpop.xlane.xlu1 %78 }
  0xcd   :  { %v132_v37 = vsel %vm113_vm5, %v79_v36, 0.0  ;;  %v133_v38 = vsel %vm114_vm6, %v79_v36, 0.0  ;;  %v154_v43 = vadd.f32 %v150_v34, %v148_v39  ;;  %v162_v44 = vadd.f32 %v151_v35, %v149_v40 }
  0xce   :  { %v134_v41 = vadd.f32 %v132_v37, %v130_v31  ;;  %v141_v42 = vadd.f32 %v133_v38, %v131_v32 }
  0xcf   :  { %v99_v45 = vpop.xlane.xlu0 %98 }
  0xd0   :  { %v135_v46 = vrot.slane %v134_v41, 4  ;;  %v142_v47 = vrot.slane %v141_v42, 4  ;;  %v152_v48 = vsel %vm128_vm9, %v99_v45, 0.0  ;;  %v153_v49 = vsel %vm129_vm10, %v99_v45, 0.0 }
  0xd1   :  { %v155_v50 = vadd.f32 %v154_v43, %v152_v48  ;;  %v163_v51 = vadd.f32 %v162_v44, %v153_v49 }
  0xd2   :  { %v136_v52 = vadd.f32 %v135_v46, %v134_v41  ;;  %v143_v53 = vadd.f32 %v142_v47, %v141_v42 }
  0xd3   :  { %v156_v54 = vrot.slane %v155_v50, 4  ;;  %v164_v55 = vrot.slane %v163_v51, 4 }
  0xd4   :  { %v137_v56 = vrot.slane %v136_v52, 2  ;;  %v144_v57 = vrot.slane %v143_v53, 2 }
  0xd5   :  { %v157_v58 = vadd.f32 %v156_v54, %v155_v50  ;;  %v165_v59 = vadd.f32 %v164_v55, %v163_v51 }
  0xd6   :  { %v138_v60 = vadd.f32 %v137_v56, %v136_v52  ;;  %v145_v61 = vadd.f32 %v144_v57, %v143_v53 }
  0xd7   :  { %v158_v62 = vrot.slane %v157_v58, 2  ;;  %v166_v63 = vrot.slane %v165_v59, 2 }
  0xd8   :  { %v139_v2 = vrot.slane %v138_v60, 1  ;;  %v146_v3 = vrot.slane %v145_v61, 1 }
  0xd9   :  { %v159_v4 = vadd.f32 %v158_v62, %v157_v58  ;;  %v167_v5 = vadd.f32 %v166_v63, %v165_v59 }
  0xda   :  { %v140_v9 = vadd.f32 %v139_v2, %v138_v60  ;;  %v147_v10 = vadd.f32 %v146_v3, %v145_v61 }
  0xdb   :  { %v160_v6 = vrot.slane %v159_v4, 1  ;;  %v168_v7 = vrot.slane %v167_v5, 1 }
  0xdd   :  { %v161_v11 = vadd.f32 %v160_v6, %v159_v4  ;;  %v169_v12 = vadd.f32 %v168_v7, %v167_v5 }
  0xdf   :  { %v170_v14 = vadd.f32 %v161_v11, %v140_v9  ;;  %v171_v15 = vadd.f32 %v169_v12, %v147_v10 }
  0xe1   :  { %v174_v16 = vadd.f32 %v173_v13, %v170_v14  ;;  %v175_v19 = vadd.f32 %v173_v13, %v171_v15 }
  0xe3   :  { %v178_v21 = vcombine.low %v174_v16, %v175_v19 }
  0xe5   :  { %v185_v22 = vrot.slane %v178_v21, %v184_v20 }
  0xe7   :  { %v192_v23 = vrot.slane %v185_v22, %v184_v20 }
  0xe9   :  { %198 = vst.msk [vmem:[#allocation9] sm:$0x3] %vm196_vm11, %v192_v23 }
  0xea   :  { %301 = shalt.err (!%p298_p0)
}
  0xeb   :  { %s302_s12 = scalar_lea.hbm %s441_s5, 32 }
  0xec   :  { %p303_p1 = scmp.ne.s32.totalorder %s441_s5, %s302_s12  ;;  %p306_p2 = scmp.lt.u32.totalorder %s302_s12, %s441_s5 }
  0xee   :  { %p308_p3 = pnand %p306_p2, %p303_p1 }
  0xf0   :  { %311 = shalt.err (!%p308_p3)
}
  0xf1   :  { %208 = dma.vmem_to_hbm [thread:$0]  %s206_s29, 32, %s441_s5, [#allocation5]  }
  0xf2   :  { %316 = dma.done.wait [#allocation5], 32  }
  0xf3   :  { %317 = vsyncadd [#allocation5], 4294967264 }
  0xf4   :  { %212 = vsyncpa [#allocation4], 1 }
  0xf5   :  { %213 = vsyncpa [#allocation7], 1 }
  0xf6   :  { %214 = vsyncpa [#allocation5], 1 }

</bundles_post_ra>
